<compile_context>
chip_gen: v7x
topology: tpu7x:2x2x1
jax: 0.10.0
libtpu: 0.0.40
codegen_flags: <defaults>
</compile_context>

<pallas_src>
from functools import partial

import jax
import jax.numpy as jnp
from jax.experimental import pallas as pl
from jax.experimental.pallas import tpu as pltpu


def _round_up(n, m):
    return ((n + m - 1) // m) * m


def _vmem_budget_bytes():
    """Usable VMEM budget for tiling decisions and vmem_limit_bytes.

    Queries the chip when possible (128 MiB on v5e/v6e, 64 MiB/core on v7x);
    falls back to the conservative 64 MiB so the numbers are safe everywhere.
    70% of physical leaves headroom for compiler-internal scratch."""
    phys = 64 * 1024 * 1024
    try:
        phys = int(pltpu.get_tpu_info().vmem_capacity_bytes)
    except Exception:
        pass
    return max(int(phys * 0.70), 32 * 1024 * 1024)


# ---------------------------------------------------------------------------
# Kernels
# ---------------------------------------------------------------------------

def _ffn_kernel_fused(x_ref, w1_ref, b1_ref, w2_ref, b2_ref, o_ref):
    # Single reduction step (tp == pf): weights are resident in VMEM for the
    # whole grid; no accumulator scratch, no zero-fill, no epilogue copy.
    # x_ref: (tm, hid) bf16   w1_ref: (hid, pf) bf16   b1_ref: (1, pf) f32
    # w2_ref: (pf, hid) bf16  b2_ref: (1, hid) f32     o_ref: (tm, hid) f32
    h = jnp.dot(x_ref[...], w1_ref[...], preferred_element_type=jnp.float32)
    h = jnp.maximum(h + b1_ref[...], 0.0)          # bias + ReLU in f32
    # Dropout is identity at inference.
    y = jnp.dot(h.astype(w2_ref.dtype), w2_ref[...],
                preferred_element_type=jnp.float32)
    o_ref[...] = (y + b2_ref[...]).astype(o_ref.dtype)


def _ffn_kernel_acc(x_ref, w1_ref, b1_ref, w2_ref, b2_ref, o_ref, acc_ref):
    # pf tiled: accumulate partial fc_2 products into an f32 VMEM scratch that
    # persists across the (last, "arbitrary") pf grid axis.
    p = pl.program_id(1)

    @pl.when(p == 0)
    def _():
        acc_ref[...] = jnp.zeros_like(acc_ref)

    h = jnp.dot(x_ref[...], w1_ref[...], preferred_element_type=jnp.float32)
    h = jnp.maximum(h + b1_ref[...], 0.0)          # bias + ReLU in f32
    acc_ref[...] += jnp.dot(h.astype(w2_ref.dtype), w2_ref[...],
                            preferred_element_type=jnp.float32)

    @pl.when(p == pl.num_programs(1) - 1)
    def _():
        # b2 add + down-cast only once per output tile (epilogue, not per step).
        o_ref[...] = (acc_ref[...] + b2_ref[...]).astype(o_ref.dtype)


# ---------------------------------------------------------------------------
# Parameter prep (hoisted out of the per-forward path)
# ---------------------------------------------------------------------------

def prepare_ffn_params(w1, b1, w2, b2, *, weight_dtype=jnp.bfloat16,
                       force_tp=None):
    """Conv1d weights [out, in, 1] -> dense matmul weights, bf16 cast, and the
    pf tile `tp` choice:
      * weights fit VMEM -> tp = pf (one reduction step, weights read from HBM
        exactly once for the whole call);
      * otherwise tp = 512 (128-lane aligned) and pf is zero-padded to a
        multiple of tp (exact: relu(x@0+0)=0 rows hit zero rows of W2).
    Returns ((w1_mat, b1_row, w2_mat, b2_row), tp)."""
    pf, hid = int(w1.shape[0]), int(w1.shape[1])
    w_itemsize = jax.ShapeDtypeStruct((), weight_dtype).dtype.itemsize

    budget = _vmem_budget_bytes()
    # Both weight slabs, conservatively assuming double-buffering.
    resident_weight_bytes = 2 * 2 * hid * pf * w_itemsize
    if force_tp is not None:
        tp = int(force_tp)
    elif resident_weight_bytes <= budget // 2:
        tp = pf
    else:
        tp = 512
    pf_pad = _round_up(pf, tp)

    w1_mat = jnp.transpose(w1[:, :, 0], (1, 0)).astype(weight_dtype)   # (hid, pf)
    w2_mat = jnp.transpose(w2[:, :, 0], (1, 0)).astype(weight_dtype)   # (pf, hid)
    b1_row = b1.reshape(1, pf).astype(jnp.float32)
    b2_row = b2.reshape(1, hid).astype(jnp.float32)

    if pf_pad != pf:
        w1_mat = jnp.pad(w1_mat, ((0, 0), (0, pf_pad - pf)))
        b1_row = jnp.pad(b1_row, ((0, 0), (0, pf_pad - pf)))
        w2_mat = jnp.pad(w2_mat, ((0, pf_pad - pf), (0, 0)))

    return (w1_mat, b1_row, w2_mat, b2_row), tp


def _pick_tm(M, hid, tp, n_p, budget):
    """Largest token tile that fits the VMEM budget (cap 1024).

    Scales with tm: bf16 x tile (x2 buffers), f32 out tile (x2), the (tm, tp)
    f32+bf16 hidden temporaries, and (tiled pf only) the f32 accumulator.
    Fixed: the W1/W2 slabs (x2 buffers) and biases."""
    if M <= 8:
        return M
    fixed = 2 * (hid * tp * 2) + 2 * (tp * hid * 2) + 2 * (tp + hid) * 4
    per_tm = 2 * hid * 2 + 2 * hid * 4 + tp * (4 + 2)
    if n_p > 1:
        per_tm += hid * 4
    avail = max(int(budget * 0.85) - fixed, 8 * per_tm)
    tm = min(avail // per_tm, 1024)
    if tm >= M:
        return M                      # single full tile (block == full dim)
    if tm >= 256:
        tm = (tm // 256) * 256        # MXU-friendly on v6e/v7x (256x256)
    else:
        tm = max(8, (tm // 8) * 8)    # sublane aligned
    return tm


# ---------------------------------------------------------------------------
# Forward
# ---------------------------------------------------------------------------

def positionwise_feedforward(x, prepared, tp):
    """x: [B, S, hid].  `prepared` = prepare_ffn_params(...) output."""
    w1_mat, b1_row, w2_mat, b2_row = prepared
    B, S, hid = x.shape
    pf_pad = w1_mat.shape[1]
    n_p = pf_pad // tp
    M = B * S

    budget = _vmem_budget_bytes()
    tm = _pick_tm(M, hid, tp, n_p, budget)
    n_m = pl.cdiv(M, tm)

    # bf16 activations into the kernel (halves x HBM DMA + VMEM, removes the
    # per-step cast).  Output stays in x.dtype; accumulation is f32.
    x2d = x.reshape(M, hid).astype(jnp.bfloat16)

    compiler_params = pltpu.CompilerParams(
        dimension_semantics=("parallel",) if n_p == 1
        else ("parallel", "arbitrary"),
        vmem_limit_bytes=budget)

    if n_p == 1:
        # Fused single-step path: weight block indices are constant -> W1/W2
        # are DMA'd from HBM exactly once for the whole call.
        out2d = pl.pallas_call(
            _ffn_kernel_fused,
            out_shape=jax.ShapeDtypeStruct((M, hid), x.dtype),
            grid_spec=pltpu.PrefetchScalarGridSpec(
                num_scalar_prefetch=0,
                grid=(n_m,),
                in_specs=[
                    pl.BlockSpec((tm, hid), lambda i: (i, 0)),   # x tile
                    pl.BlockSpec((hid, tp), lambda i: (0, 0)),   # W1 (resident)
                    pl.BlockSpec((1, tp),   lambda i: (0, 0)),   # b1
                    pl.BlockSpec((tp, hid), lambda i: (0, 0)),   # W2 (resident)
                    pl.BlockSpec((1, hid),  lambda i: (0, 0)),   # b2
                ],
                out_specs=pl.BlockSpec((tm, hid), lambda i: (i, 0)),
            ),
            compiler_params=compiler_params,
        )(x2d, w1_mat, b1_row, w2_mat, b2_row)
    else:
        # Tiled pf path: reduction axis last; serpentine the p direction per
        # token tile so the weight slab at each i -> i+1 boundary is reused
        # without a re-DMA.
        def _serp(i, p):
            return p + (i % 2) * (n_p - 1 - 2 * p)

        out2d = pl.pallas_call(
            _ffn_kernel_acc,
            out_shape=jax.ShapeDtypeStruct((M, hid), x.dtype),
            grid_spec=pltpu.PrefetchScalarGridSpec(
                num_scalar_prefetch=0,
                grid=(n_m, n_p),
                in_specs=[
                    pl.BlockSpec((tm, hid), lambda i, p: (i, 0)),            # x tile (held across p)
                    pl.BlockSpec((hid, tp), lambda i, p: (0, _serp(i, p))),  # W1 column slab
                    pl.BlockSpec((1, tp),   lambda i, p: (0, _serp(i, p))),  # b1 slab
                    pl.BlockSpec((tp, hid), lambda i, p: (_serp(i, p), 0)),  # W2 row slab
                    pl.BlockSpec((1, hid),  lambda i, p: (0, 0)),            # b2
                ],
                out_specs=pl.BlockSpec((tm, hid), lambda i, p: (i, 0)),
                scratch_shapes=[pltpu.VMEM((tm, hid), jnp.float32)],         # f32 accumulator
            ),
            compiler_params=compiler_params,
        )(x2d, w1_mat, b1_row, w2_mat, b2_row)

    return out2d.reshape(B, S, hid)


@partial(jax.jit, static_argnames=("tp",))
def ffn_forward(x, w1_mat, b1_row, w2_mat, b2_row, *, tp):
    return positionwise_feedforward(x, (w1_mat, b1_row, w2_mat, b2_row), tp)


def _reference(x, w1, b1, w2, b2):
    # Pure-JAX f32 reference mirroring the PyTorch forward (dropout = identity).
    h = jnp.einsum("bsh,ph->bsp", x, w1[:, :, 0]) + b1[None, None, :]
    h = jnp.maximum(h, 0.0)
    y = jnp.einsum("bsp,hp->bsh", h, w2[:, :, 0]) + b2[None, None, :]
    return y


if __name__ == "__main__":
    key = jax.random.PRNGKey(0)

    # ---- Test 1: small shapes consistent with the module (fused path) ------
    B, S, hid, pf = 2, 8, 32, 64
    kx, kw1, kb1, kw2, kb2, k2 = jax.random.split(key, 6)

    x = jax.random.normal(kx, (B, S, hid), dtype=jnp.float32)
    # Parameter shapes match nn.Conv1d(hid, pf, 1) / nn.Conv1d(pf, hid, 1).
    w1 = jax.random.normal(kw1, (pf, hid, 1), dtype=jnp.float32) * 0.1
    b1 = jax.random.normal(kb1, (pf,), dtype=jnp.float32) * 0.1
    w2 = jax.random.normal(kw2, (hid, pf, 1), dtype=jnp.float32) * 0.1
    b2 = jax.random.normal(kb2, (hid,), dtype=jnp.float32) * 0.1

    (w1_mat, b1_row, w2_mat, b2_row), tp = prepare_ffn_params(w1, b1, w2, b2)
    out = jax.block_until_ready(
        ffn_forward(x, w1_mat, b1_row, w2_mat, b2_row, tp=tp))

    ref = _reference(x, w1, b1, w2, b2)
    assert out.shape == (B, S, hid)
    # bf16 MXU inputs with f32 accumulation -> bf16-level tolerance vs f32 ref.
    assert jnp.allclose(out, ref, atol=3e-2, rtol=3e-2), "mismatch (fused path)"

    # ---- Test 2: force the tiled-pf accumulator path (tp < pf) -------------
    pf2 = 256
    kw1b, kb1b, kw2b, kb2b = jax.random.split(k2, 4)
    w1b = jax.random.normal(kw1b, (pf2, hid, 1), dtype=jnp.float32) * 0.1
    b1b = jax.random.normal(kb1b, (pf2,), dtype=jnp.float32) * 0.1
    w2b = jax.random.normal(kw2b, (hid, pf2, 1), dtype=jnp.float32) * 0.1
    b2b = jax.random.normal(kb2b, (hid,), dtype=jnp.float32) * 0.1

    (w1m2, b1r2, w2m2, b2r2), tp2 = prepare_ffn_params(
        w1b, b1b, w2b, b2b, force_tp=128)
    out2 = jax.block_until_ready(
        ffn_forward(x, w1m2, b1r2, w2m2, b2r2, tp=tp2))
    ref2 = _reference(x, w1b, b1b, w2b, b2b)
    assert out2.shape == (B, S, hid)
    assert jnp.allclose(out2, ref2, atol=3e-2, rtol=3e-2), "mismatch (tiled path)"

    print("KERNEL_OK")
</pallas_src>

<mosaic_0001>
module attributes {stable_mosaic.version = 11 : i64} {
  func.func @_ffn_kernel_fused(%arg0: i32, %arg1: memref<16x32xbf16, #tpu.memory_space<vmem>>, %arg2: memref<32x64xbf16, #tpu.memory_space<vmem>>, %arg3: memref<1x64xf32, #tpu.memory_space<vmem>>, %arg4: memref<64x32xbf16, #tpu.memory_space<vmem>>, %arg5: memref<1x32xf32, #tpu.memory_space<vmem>>, %arg6: memref<16x32xf32, #tpu.memory_space<vmem>>) attributes {dimension_semantics = [#tpu.dimension_semantics<parallel>], iteration_bounds = array<i64: 1>, scalar_prefetch = 0 : i64, scratch_operands = 0 : i64, tpu.core_type = #tpu.core_type<tc>, window_params = [{transform_indices = @transform_0, window_bounds = array<i64: 16, 32>}, {pipeline_mode = #tpu.pipeline_mode<synchronous>, transform_indices = @transform_1, window_bounds = array<i64: 32, 64>}, {pipeline_mode = #tpu.pipeline_mode<synchronous>, transform_indices = @transform_2, window_bounds = array<i64: 1, 64>}, {pipeline_mode = #tpu.pipeline_mode<synchronous>, transform_indices = @transform_3, window_bounds = array<i64: 64, 32>}, {pipeline_mode = #tpu.pipeline_mode<synchronous>, transform_indices = @transform_4, window_bounds = array<i64: 1, 32>}, {transform_indices = @transform_5, window_bounds = array<i64: 16, 32>}]} {
    %c0 = arith.constant 0 : index
    %c0_0 = arith.constant 0 : index
    %0 = vector.load %arg1[%c0, %c0_0] : memref<16x32xbf16, #tpu.memory_space<vmem>>, vector<16x32xbf16>
    %c0_1 = arith.constant 0 : index
    %c0_2 = arith.constant 0 : index
    %1 = vector.load %arg2[%c0_1, %c0_2] : memref<32x64xbf16, #tpu.memory_space<vmem>>, vector<32x64xbf16>
    %cst = arith.constant dense<0.000000e+00> : vector<16x64xf32>
    %2 = tpu.matmul %0, %1, %cst {dimension_numbers = #tpu.dot_dimension_numbers<[1], [0], [0], [1], [0, 0, 1, 1], [], []>} : vector<16x32xbf16>, vector<32x64xbf16>, vector<16x64xf32> -> vector<16x64xf32>
    %c0_3 = arith.constant 0 : index
    %c0_4 = arith.constant 0 : index
    %3 = vector.load %arg3[%c0_3, %c0_4] : memref<1x64xf32, #tpu.memory_space<vmem>>, vector<1x64xf32>
    %4 = vector.broadcast %3 : vector<1x64xf32> to vector<16x64xf32>
    %5 = arith.addf %2, %4 : vector<16x64xf32>
    %cst_5 = arith.constant 0.000000e+00 : f32
    %6 = vector.broadcast %cst_5 : f32 to vector<16x64xf32>
    %7 = arith.maximumf %5, %6 : vector<16x64xf32>
    %8 = arith.truncf %7 : vector<16x64xf32> to vector<16x64xbf16>
    %c0_6 = arith.constant 0 : index
    %c0_7 = arith.constant 0 : index
    %9 = vector.load %arg4[%c0_6, %c0_7] : memref<64x32xbf16, #tpu.memory_space<vmem>>, vector<64x32xbf16>
    %cst_8 = arith.constant dense<0.000000e+00> : vector<16x32xf32>
    %10 = tpu.matmul %8, %9, %cst_8 {dimension_numbers = #tpu.dot_dimension_numbers<[1], [0], [0], [1], [0, 0, 1, 1], [], []>} : vector<16x64xbf16>, vector<64x32xbf16>, vector<16x32xf32> -> vector<16x32xf32>
    %c0_9 = arith.constant 0 : index
    %c0_10 = arith.constant 0 : index
    %11 = vector.load %arg5[%c0_9, %c0_10] : memref<1x32xf32, #tpu.memory_space<vmem>>, vector<1x32xf32>
    %12 = vector.broadcast %11 : vector<1x32xf32> to vector<16x32xf32>
    %13 = arith.addf %10, %12 : vector<16x32xf32>
    %c0_11 = arith.constant 0 : index
    %c0_12 = arith.constant 0 : index
    %14 = vector.load %arg6[%c0_11, %c0_12] : memref<16x32xf32, #tpu.memory_space<vmem>>, vector<16x32xf32>
    tpu.vector_store %arg6[%c0_11, %c0_12], %13 {strides = array<i32>} : memref<16x32xf32, #tpu.memory_space<vmem>>, vector<16x32xf32>,
    return
  }
  func.func @transform_0(%arg0: i32) -> (i32, i32) {
    %c0_i32 = arith.constant 0 : i32
    %c0_i32_0 = arith.constant 0 : i32
    return %arg0, %c0_i32 : i32, i32
  }
  func.func @transform_1(%arg0: i32) -> (i32, i32) {
    %c0_i32 = arith.constant 0 : i32
    %c0_i32_0 = arith.constant 0 : i32
    %c0_i32_1 = arith.constant 0 : i32
    return %c0_i32, %c0_i32_0 : i32, i32
  }
  func.func @transform_2(%arg0: i32) -> (i32, i32) {
    %c0_i32 = arith.constant 0 : i32
    %c0_i32_0 = arith.constant 0 : i32
    %c0_i32_1 = arith.constant 0 : i32
    return %c0_i32, %c0_i32_0 : i32, i32
  }
  func.func @transform_3(%arg0: i32) -> (i32, i32) {
    %c0_i32 = arith.constant 0 : i32
    %c0_i32_0 = arith.constant 0 : i32
    %c0_i32_1 = arith.constant 0 : i32
    return %c0_i32, %c0_i32_0 : i32, i32
  }
  func.func @transform_4(%arg0: i32) -> (i32, i32) {
    %c0_i32 = arith.constant 0 : i32
    %c0_i32_0 = arith.constant 0 : i32
    %c0_i32_1 = arith.constant 0 : i32
    return %c0_i32, %c0_i32_0 : i32, i32
  }
  func.func @transform_5(%arg0: i32) -> (i32, i32) {
    %c0_i32 = arith.constant 0 : i32
    %c0_i32_0 = arith.constant 0 : i32
    return %arg0, %c0_i32 : i32, i32
  }
}

</mosaic_0001>

<bundles_post_ra>
// kernel: ffn_forward.1
= control target key start
LH: loop header
LB: loop body
LE: loop exit
PB: predicated region body
PF: predicated region fallthrough
CT: control target
= control target key end

     0   :  { %v277_v1 = vmov 0.0   ;;  %vm278_vm0 = vmmov 0   ;;  %vm52_vm1 = vcmask 261120   ;;  %s354_s0 = inlined_call_operand.vmem [shape: bf16[16,32], index: 0, kind: input, shape index: {}]   ;;  %s355_s1 = inlined_call_operand.vmem [shape: bf16[32,64], index: 1, kind: input, shape index: {}]   ;;  %s356_s2 = inlined_call_operand.vmem [shape: f32[1,64], index: 2, kind: input, shape index: {}]   ;;  %s357_s3 = inlined_call_operand.vmem [shape: bf16[64,32], index: 3, kind: input, shape index: {}]   ;;  %s358_s4 = inlined_call_operand.vmem [shape: f32[1,32], index: 4, kind: input, shape index: {}]   ;;  %s359_s5 = inlined_call_operand.hbm [shape: f32[16,32], index: 5, kind: output, shape index: {}]  }
   0x1   :  { %v246_v0 = vld [vmem:[%s355_s1] sm:$0xff]   ;;  %221 = vmatprep.subr.bf16.mxu0 %v277_v1  ;;  %229 = vmatprep.subr.bf16.mxu1 %v277_v1  ;;  %v247_v2 = vld [vmem:[%s355_s1 + $0x8] sm:$0xff]  }
   0x2   :  { %222 = vmatpush3.bf16.msra.mxu0 %v246_v0  ;;  %225 = vmatprep.mubr.msk.bf16.mxu0 %vm278_vm0, %v277_v1  ;;  %v249_v3 = vld [vmem:[%s357_s3] sm:$0xff]   ;;  %v250_v5 = vld [vmem:[%s357_s3 + $0x8] sm:$0xff]  }
   0x3   :  { %223 = vmatprep.subr.bf16.mxu0 %v277_v1  ;;  %237 = vmatprep.mubr.msk.bf16.mxu1 %vm278_vm0, %v277_v1  ;;  %v248_v4 = vld [vmem:[%s354_s0] sm:$0xff]  }
   0x4   :  { %230 = vmatpush3.bf16.msra.mxu1 %v249_v3 }
   0x5   :  { %231 = vmatprep.subr.bf16.mxu1 %v277_v1 }
   0x6   :  { %224 = vmatpush3.bf16.msra.mxu0 %v247_v2 }
   0x7   :  { %10 = vsyncpa [#allocation3], 0  ;;  %v251_v6 = vld [vmem:[%s357_s3 + $0x10] sm:$0xff]   ;;  %v252_v7 = vld [vmem:[%s357_s3 + $0x18] sm:$0xff]   ;;  %vm139_vm2 = vcmask 523264   ;;  %s279_s3 = smov [#allocation2]  }
   0x8   :  { %232 = vmatpush3.bf16.msra.mxu1 %v250_v5  ;;  %v202_v8 = vld [vmem:[%s356_s2] ss:$0 sm:$0xff]  ;;  %s191_s9 = sshll.u32 %s279_s3, 4  ;;  %s192_s9 = int_to_ptr.vmem [resolvable:$true] %s191_s9 }
   0x9   :  { %226 = vmatmul.mubr.msk.bf16.vlgmr.msra.gmra.mrb[0].mxu0 %vm52_vm1, %v248_v4  ;;  %233 = vmatprep.subr.bf16.mxu1 %v277_v1  ;;  %v207_v18 = vld [vmem:[%s358_s4] ss:$0 sm:$0xff]  ;;  %s253_s2 = scalar_lea.vmem %s192_s9, 256  ;;  %p258_p1 = scmp.lt.s32.totalorder %s192_s9, %s192_s9 }
   0xa   :  { %p254_p0 = scmp.ne.s32.totalorder %s192_s9, %s253_s2  ;;  %p259_p2 = scmp.lt.s32.totalorder %s253_s2, %s253_s2 }
   0xc   :  { %234 = vmatpush3.bf16.msra.mxu1 %v251_v6  ;;  %p260_p3 = por %p259_p2, %p258_p1 }
   0xd   :  { %235 = vmatprep.subr.bf16.mxu1 %v277_v1 }
   0xe   :  { %p261_p4 = pnand %p260_p3, %p254_p0 }
  0x10   :  { %236 = vmatpush3.bf16.msra.mxu1 %v252_v7 }
  0xdc   :  { %v90_v9 = vpop.f32.mrb[0].mxu0 }
  0xdd   :  { %v91_v10 = vadd.f32 %v202_v8, %v90_v9  ;;  %v227_v11 = vpop.f32.mrb[1].mxu0 }
  0xde   :  { %v93_v12 = vpop.f32.mrb[2].mxu0 }
  0xdf   :  { %v94_v13 = vadd.f32 %v202_v8, %v93_v12  ;;  %v228_v14 = vpop.f32.mrb[3].mxu0  ;;  %v97_v15 = vmax.f32 %v91_v10, 0.0 }
  0xe1   :  { %v98_v16 = vmax.f32 %v94_v13, 0.0 }
  0xe3   :  { %v99_v17 = vpack.c.bf16 %v98_v16, %v97_v15 }
  0xe5   :  { %238 = vmatmul.mubr.msk.bf16.vlgmr.msra.gmra.mrb[0].mxu1 %vm139_vm2, %v99_v17 }
 0x1b8   :  { %v177_v19 = vpop.f32.mrb[0].mxu1 }
 0x1b9   :  { %v178_v20 = vadd.f32 %v207_v18, %v177_v19  ;;  %v239_v21 = vpop.f32.mrb[1].mxu1 }
 0x1ba   :  { %v180_v22 = vpop.f32.mrb[2].mxu1 }
 0x1bb   :  { %184 = vst.msk [vmem:[#allocation2] sm:$0xff] %vm52_vm1, %v178_v20  ;;  %v181_v23 = vadd.f32 %v207_v18, %v180_v22  ;;  %v240_v24 = vpop.f32.mrb[3].mxu1 }
 0x1bd   :  { %185 = vst.msk [vmem:[#allocation2 + $0x8] sm:$0xff] %vm52_vm1, %v181_v23 }
 0x1be   :  { %264 = shalt.err (!%p261_p4)
}
 0x1bf   :  { %s265_s11 = scalar_lea.hbm %s359_s5, 256 }
 0x1c0   :  { %p266_p5 = scmp.ne.s32.totalorder %s359_s5, %s265_s11  ;;  %p269_p6 = scmp.lt.u32.totalorder %s265_s11, %s359_s5 }
 0x1c2   :  { %p271_p7 = pnand %p269_p6, %p266_p5 }
 0x1c4   :  { %274 = shalt.err (!%p271_p7)
}
 0x1c5   :  { %s280_s16 = smov 128   ;;  %s281_s17 = smov 8  }
 0x1c6   :  { %197 = dma.vmem_to_hbm [thread:$0]  %s192_s9, 256, %s359_s5, [#allocation3], %s280_s16, %s280_s16, %s281_s17  }
 0x1c7   :  { %275 = dma.done.wait [#allocation3], 256  }
 0x1c8   :  { %276 = vsyncadd [#allocation3], 4294967040 }
 0x1c9   :  { %201 = vsyncpa [#allocation3], 1 }

</bundles_post_ra>
